<compile_context>
chip_gen: v7x
topology: tpu7x:2x2x1
jax: 0.10.0
libtpu: 0.0.40
codegen_flags: <defaults>
</compile_context>

<pallas_src>
import jax
import jax.numpy as jnp
from jax.experimental import pallas as pl
from jax.experimental.pallas import tpu as pltpu


def _swap_kernel(w_ref, scale_ref, dir_ref, new_w_ref, delta_ref):
    """One grid step processes TB batch rows.

    w_ref      : (TB, F) VMEM tile of the flattened latents
    scale_ref  : (TB, 1) VMEM per-sample scale = (src_gender*2-1)*magnitude
    dir_ref    : (1, F)  VMEM flattened gender direction (same block every step)
    new_w_ref  : (TB, F) VMEM output tile
    delta_ref  : (TB, F) VMEM output tile
    """
    delta = scale_ref[...] * dir_ref[...]      # (TB,1) * (1,F) -> (TB,F), VPU
    delta_ref[...] = delta
    new_w_ref[...] = w_ref[...] + delta


def _choose_tb(B, F, itemsize=4, target_tile_bytes=2 * 1024 * 1024):
    """Pick a batch-tile size: ~2 MiB per buffer, multiple of 8, capped at B."""
    rows = max(1, target_tile_bytes // (F * itemsize))
    if rows >= B:
        return B                        # one block covers the whole batch dim
    rows = max(8, (rows // 8) * 8)      # keep sublane-aligned tiles
    return min(rows, B)


def base_swapper_forward(w, src_gender, gender_dir, magnitude=1.0):
    """Pallas implementation of BaseSwapper.forward.

    w          : [B, S, D] float32
    src_gender : [B]       float32 (0.0 or 1.0 typically)
    gender_dir : [S, D]    float32 (registered buffer)
    magnitude  : python float / scalar
    returns (new_w, delta), both [B, S, D] float32
    """
    B, S, D = w.shape
    F = S * D

    w32 = jnp.asarray(w, jnp.float32).reshape(B, F)            # lane-dense layout
    dir_flat = jnp.asarray(gender_dir, jnp.float32).reshape(1, F)
    sign = jnp.asarray(src_gender, jnp.float32).reshape(B) * 2.0 - 1.0
    scale = (sign * jnp.float32(magnitude)).reshape(B, 1)      # per-sample scale

    TB = _choose_tb(B, F)
    grid = (pl.cdiv(B, TB),)

    new_w, delta = pl.pallas_call(
        _swap_kernel,
        grid=grid,
        in_specs=[
            pl.BlockSpec((TB, F), lambda b: (b, 0)),   # w
            pl.BlockSpec((TB, 1), lambda b: (b, 0)),   # per-sample scale
            pl.BlockSpec((1, F), lambda b: (0, 0)),    # gender_dir (constant block)
        ],
        out_specs=[
            pl.BlockSpec((TB, F), lambda b: (b, 0)),   # new_w
            pl.BlockSpec((TB, F), lambda b: (b, 0)),   # delta
        ],
        out_shape=(
            jax.ShapeDtypeStruct((B, F), jnp.float32),
            jax.ShapeDtypeStruct((B, F), jnp.float32),
        ),
        compiler_params=pltpu.CompilerParams(
            dimension_semantics=("parallel",),         # shards batch over TCs on v7x
        ),
    )(w32, scale, dir_flat)

    # TODO(synk): if callers never use `delta`, drop the second output to cut
    # ~1/3 of HBM write traffic in this memory-bound op.
    return new_w.reshape(B, S, D), delta.reshape(B, S, D)


if __name__ == "__main__":
    # Deterministic synthetic parameters / inputs (no file loads).
    B, S, D = 2, 8, 32
    key = jax.random.PRNGKey(0)
    k_w, k_dir = jax.random.split(key)

    w = jax.random.normal(k_w, (B, S, D), dtype=jnp.float32)
    # Synthetic stand-in for np.load(.../mtf/0.npy) buffer:
    gender_dir = jax.random.normal(k_dir, (S, D), dtype=jnp.float32)
    src_gender = jnp.array([0.0, 1.0], dtype=jnp.float32)  # one "female", one "male"
    magnitude = 0.5

    new_w, delta = base_swapper_forward(w, src_gender, gender_dir, magnitude)
    new_w, delta = jax.block_until_ready((new_w, delta))

    # Reference check in plain JAX (mirrors the PyTorch math exactly).
    sign = src_gender * 2.0 - 1.0
    delta_ref = sign[:, None, None] * gender_dir[None, :, :] * magnitude
    new_w_ref = w + delta_ref
    assert jnp.allclose(delta, delta_ref, atol=1e-6, rtol=1e-6)
    assert jnp.allclose(new_w, new_w_ref, atol=1e-6, rtol=1e-6)

    print("KERNEL_OK")
</pallas_src>

<mosaic_0001>
module attributes {stable_mosaic.version = 11 : i64} {
  func.func @_swap_kernel(%arg0: i32, %arg1: memref<2x256xf32, #tpu.memory_space<vmem>>, %arg2: memref<2x1xf32, #tpu.memory_space<vmem>>, %arg3: memref<1x256xf32, #tpu.memory_space<vmem>>, %arg4: memref<2x256xf32, #tpu.memory_space<vmem>>, %arg5: memref<2x256xf32, #tpu.memory_space<vmem>>) attributes {dimension_semantics = [#tpu.dimension_semantics<parallel>], iteration_bounds = array<i64: 1>, scalar_prefetch = 0 : i64, scratch_operands = 0 : i64, tpu.core_type = #tpu.core_type<tc>, window_params = [{transform_indices = @transform_0, window_bounds = array<i64: 2, 256>}, {transform_indices = @transform_1, window_bounds = array<i64: 2, 1>}, {pipeline_mode = #tpu.pipeline_mode<synchronous>, transform_indices = @transform_2, window_bounds = array<i64: 1, 256>}, {transform_indices = @transform_3, window_bounds = array<i64: 2, 256>}, {transform_indices = @transform_4, window_bounds = array<i64: 2, 256>}]} {
    %c0 = arith.constant 0 : index
    %c0_0 = arith.constant 0 : index
    %0 = vector.load %arg2[%c0, %c0_0] : memref<2x1xf32, #tpu.memory_space<vmem>>, vector<2x1xf32>
    %c0_1 = arith.constant 0 : index
    %c0_2 = arith.constant 0 : index
    %1 = vector.load %arg3[%c0_1, %c0_2] : memref<1x256xf32, #tpu.memory_space<vmem>>, vector<1x256xf32>
    %2 = vector.broadcast %0 : vector<2x1xf32> to vector<2x256xf32>
    %3 = vector.broadcast %1 : vector<1x256xf32> to vector<2x256xf32>
    %4 = arith.mulf %2, %3 : vector<2x256xf32>
    %c0_3 = arith.constant 0 : index
    %c0_4 = arith.constant 0 : index
    %5 = vector.load %arg5[%c0_3, %c0_4] : memref<2x256xf32, #tpu.memory_space<vmem>>, vector<2x256xf32>
    tpu.vector_store %arg5[%c0_3, %c0_4], %4 {strides = array<i32>} : memref<2x256xf32, #tpu.memory_space<vmem>>, vector<2x256xf32>,
    %c0_5 = arith.constant 0 : index
    %c0_6 = arith.constant 0 : index
    %6 = vector.load %arg1[%c0_5, %c0_6] : memref<2x256xf32, #tpu.memory_space<vmem>>, vector<2x256xf32>
    %7 = arith.addf %6, %4 : vector<2x256xf32>
    %c0_7 = arith.constant 0 : index
    %c0_8 = arith.constant 0 : index
    %8 = vector.load %arg4[%c0_7, %c0_8] : memref<2x256xf32, #tpu.memory_space<vmem>>, vector<2x256xf32>
    tpu.vector_store %arg4[%c0_7, %c0_8], %7 {strides = array<i32>} : memref<2x256xf32, #tpu.memory_space<vmem>>, vector<2x256xf32>,
    return
  }
  func.func @transform_0(%arg0: i32) -> (i32, i32) {
    %c0_i32 = arith.constant 0 : i32
    %c0_i32_0 = arith.constant 0 : i32
    return %arg0, %c0_i32 : i32, i32
  }
  func.func @transform_1(%arg0: i32) -> (i32, i32) {
    %c0_i32 = arith.constant 0 : i32
    %c0_i32_0 = arith.constant 0 : i32
    return %arg0, %c0_i32 : i32, i32
  }
  func.func @transform_2(%arg0: i32) -> (i32, i32) {
    %c0_i32 = arith.constant 0 : i32
    %c0_i32_0 = arith.constant 0 : i32
    %c0_i32_1 = arith.constant 0 : i32
    return %c0_i32, %c0_i32_0 : i32, i32
  }
  func.func @transform_3(%arg0: i32) -> (i32, i32) {
    %c0_i32 = arith.constant 0 : i32
    %c0_i32_0 = arith.constant 0 : i32
    return %arg0, %c0_i32 : i32, i32
  }
  func.func @transform_4(%arg0: i32) -> (i32, i32) {
    %c0_i32 = arith.constant 0 : i32
    %c0_i32_0 = arith.constant 0 : i32
    return %arg0, %c0_i32 : i32, i32
  }
}

</mosaic_0001>

<bundles_post_ra>
// kernel: tpu_custom_call.1
= control target key start
LH: loop header
LB: loop body
LE: loop exit
PB: predicated region body
PF: predicated region fallthrough
CT: control target
= control target key end

     0   :  { %10 = vsyncpa [#allocation3], 0  ;;  %s245_s0 = inlined_call_operand.hbm [shape: f32[2,256], index: 0, kind: input, shape index: {}]   ;;  %s246_s1 = inlined_call_operand.vmem [shape: f32[2,1], index: 1, kind: input, shape index: {}]   ;;  %s247_s2 = inlined_call_operand.vmem [shape: f32[1,256], index: 2, kind: input, shape index: {}]   ;;  %s248_s3 = inlined_call_operand.hbm [shape: f32[2,256], index: 3, kind: output, shape index: {0}]   ;;  %s249_s4 = inlined_call_operand.hbm [shape: f32[2,256], index: 4, kind: output, shape index: {1}]  }
   0x1   :  { %11 = vsyncpa [#allocation4], 0 }
   0x2   :  { %12 = vsyncpa [#allocation7], 0  ;;  %s173_s15 = smov [#allocation2]   ;;  %s101_s19 = scalar_lea.hbm %s245_s0, 64 }
   0x3   :  { %s19_s16 = sshll.u32 %s173_s15, 4  ;;  %p102_p0 = scmp.ne.s32.totalorder %s245_s0, %s101_s19  ;;  %s20_s16 = int_to_ptr.vmem [resolvable:$true] %s19_s16 }
   0x4   :  { %p105_p1 = scmp.lt.u32.totalorder %s101_s19, %s245_s0 }
   0x6   :  { %p107_p2 = pnand %p105_p1, %p102_p0 }
   0x8   :  { %110 = shalt.err (!%p107_p2)
}
   0x9   :  { %s111_s24 = scalar_lea.vmem %s20_s16, 64  ;;  %p116_p4 = scmp.lt.s32.totalorder %s20_s16, %s20_s16 }
   0xa   :  { %p112_p3 = scmp.ne.s32.totalorder %s20_s16, %s111_s24  ;;  %p117_p5 = scmp.lt.s32.totalorder %s111_s24, %s111_s24 }
   0xc   :  { %p118_p6 = por %p117_p5, %p116_p4 }
   0xe   :  { %p119_p7 = pnand %p118_p6, %p112_p3 }
  0x10   :  { %122 = shalt.err (!%p119_p7)
}
  0x11   :  { %22 = dma.hbm_to_vmem [thread:$0]  %s245_s0, 64, %s20_s16, [#allocation3]  }
  0x12   :  { %167 = dma.done.wait [#allocation3], 64  }
  0x13   :  { %168 = vsyncadd [#allocation3], 4294967232  ;;  %v174_v0 = vmov 0   ;;  %v30_v1 = vld [vmem:[%s246_s1] sm:$0x3]  ;;  %v38_v2 = vlaneseq  ;;  %s176_s0 = smov [#allocation6]  }
  0x14   :  { %100 = vset.pattern.permute.xlu0 %v174_v0  ;;  %v175_v6 = vmov 1983009808   ;;  %v31_v8 = vld [vmem:[%s247_s2] sm:$0x3]  ;;  %s81_s5 = sshll.u32 %s176_s0, 4  ;;  %s177_s1 = smov [#allocation5]   ;;  %s82_s5 = int_to_ptr.vmem [resolvable:$true] %s81_s5 }
  0x15   :  { %34 = vperm.xlu0 %100, %v30_v1   ;;  %v39_v3 = vshrl.u32 %v38_v2, 7  ;;  %v54_v7 = vunpack.c.l.s4 %v175_v6  ;;  %v62_v17 = vld [vmem:[#allocation2] sm:$0xf]  ;;  %s71_s6 = sshll.u32 %s177_s1, 4  ;;  %s123_s7 = scalar_lea.vmem %s82_s5, 64  ;;  %s72_s6 = int_to_ptr.vmem [resolvable:$true] %s71_s6 }
  0x16   :  { %p124_p8 = scmp.ne.s32.totalorder %s82_s5, %s123_s7  ;;  %p128_p9 = scmp.lt.s32.totalorder %s82_s5, %s82_s5 }
  0x17   :  { %v40_v4 = vsub.s32 0, %v39_v3  ;;  %v44_v5 = vsub.s32 1, %v39_v3  ;;  %v55_v11 = vunpack.c.0.s8 %v54_v7  ;;  %p129_p10 = scmp.lt.s32.totalorder %s123_s7, %s123_s7 }
  0x19   :  { %v41_v9 = vrot.slane %v31_v8, %v40_v4  ;;  %v45_v10 = vrot.slane %v31_v8, %v44_v5  ;;  %v58_v13 = vsub.s32 %v55_v11, %v39_v3  ;;  %p130_p11 = por %p129_p10, %p128_p9 }
  0x1b   :  { %p131_p12 = pnand %p130_p11, %p124_p8 }
  0x94   :  { %v35_v12 = vpop.permute.xlu0 %34 }
  0x95   :  { %v48_v14 = vmul.f32 %v41_v9, %v35_v12  ;;  %v49_v15 = vmul.f32 %v45_v10, %v35_v12 }
  0x97   :  { %v52_v16 = vcombine.low %v48_v14, %v49_v15 }
  0x99   :  { %v59_v18 = vrot.slane %v52_v16, %v58_v13  ;;  %94 = vst.sshfl [vmem:[#allocation6] sm:$0x33 pattern:$0x76325410] %v52_v16 }
  0x9a   :  { %134 = shalt.err (!%p131_p12)
}
  0x9b   :  { %s135_s9 = scalar_lea.hbm %s249_s4, 64 }
  0x9c   :  { %p136_p13 = scmp.ne.s32.totalorder %s249_s4, %s135_s9  ;;  %p139_p0 = scmp.lt.u32.totalorder %s135_s9, %s249_s4 }
  0x9e   :  { %p141_p1 = pnand %p139_p0, %p136_p13 }
  0xa0   :  { %144 = shalt.err (!%p141_p1)
}
  0xa1   :  { %84 = dma.vmem_to_hbm [thread:$0]  %s82_s5, 64, %s249_s4, [#allocation7]   ;;  %v63_v19 = vadd.f32 %v62_v17, %v59_v18 }
  0xa2   :  { %s145_s16 = scalar_lea.vmem %s72_s6, 64  ;;  %p150_p3 = scmp.lt.s32.totalorder %s72_s6, %s72_s6 }
  0xa3   :  { %64 = vst [vmem:[#allocation5] sm:$0xf] %v63_v19  ;;  %p146_p2 = scmp.ne.s32.totalorder %s72_s6, %s145_s16  ;;  %p151_p4 = scmp.lt.s32.totalorder %s145_s16, %s145_s16 }
  0xa5   :  { %p152_p5 = por %p151_p4, %p150_p3 }
  0xa7   :  { %p153_p6 = pnand %p152_p5, %p146_p2 }
  0xa9   :  { %156 = shalt.err (!%p153_p6)
}
  0xaa   :  { %s157_s19 = scalar_lea.hbm %s248_s3, 64 }
  0xab   :  { %p158_p7 = scmp.ne.s32.totalorder %s248_s3, %s157_s19  ;;  %p161_p8 = scmp.lt.u32.totalorder %s157_s19, %s248_s3 }
  0xad   :  { %p163_p9 = pnand %p161_p8, %p158_p7 }
  0xaf   :  { %166 = shalt.err (!%p163_p9)
}
  0xb0   :  { %74 = dma.vmem_to_hbm [thread:$0]  %s72_s6, 64, %s248_s3, [#allocation4]  }
  0xb1   :  { %169 = dma.done.wait [#allocation4], 64  }
  0xb2   :  { %170 = vsyncadd [#allocation4], 4294967232 }
  0xb3   :  { %171 = dma.done.wait [#allocation7], 64  }
  0xb4   :  { %172 = vsyncadd [#allocation7], 4294967232 }
  0xb5   :  { %91 = vsyncpa [#allocation3], 1 }
  0xb6   :  { %92 = vsyncpa [#allocation4], 1 }
  0xb7   :  { %93 = vsyncpa [#allocation7], 1 }

</bundles_post_ra>
